<compile_context>
chip_gen: v7x
topology: tpu7x:2x2x1
jax: 0.10.0
libtpu: 0.0.40
codegen_flags: <defaults>
</compile_context>

<pallas_src>
import functools

import jax
import jax.numpy as jnp
from jax.experimental import pallas as pl
from jax.experimental.pallas import tpu as pltpu


def _round_down(x, m):
    return (x // m) * m


def _round_up(x, m):
    return ((x + m - 1) // m) * m


def _ce_label_smooth_kernel(logits_ref, targets_ref, partial_ref, *,
                            epsilon, num_classes, batch, tile_b):
    # logits_ref: (TB, C) block in VMEM (input dtype); targets_ref: (TB, 1) i32.
    x = logits_ref[...]                                             # (TB, C)
    t = targets_ref[...]                                            # (TB, 1)
    C = x.shape[1]

    # Row max in the input dtype (exact for bf16), promoted for the f32 math.
    m = jnp.max(x, axis=1, keepdims=True).astype(jnp.float32)       # (TB, 1)

    # Target-logit extraction: (1, C) iota broadcast against t, masked row
    # sum (exact in bf16: exactly one nonzero per row).  No (TB, C) int32
    # iota is materialized.
    class_ids = jax.lax.broadcasted_iota(jnp.int32, (1, C), 1)      # (1, C)
    x_t = jnp.sum(jnp.where(class_ids == t, x, jnp.zeros((), x.dtype)),
                  axis=1, keepdims=True).astype(jnp.float32)        # (TB, 1)

    # f32 only where it matters: the exp path and the long row accumulation.
    xf = x.astype(jnp.float32)
    row_sum = jnp.sum(xf, axis=1, keepdims=True)                    # (TB, 1)
    lse = jnp.log(jnp.sum(jnp.exp(xf - m), axis=1, keepdims=True))  # (TB, 1)

    # per-row smoothed NLL:
    #   sum_c smooth_c * (m + lse - x_c)
    # = (m + lse) - (1-eps)*x[t] - (eps/C)*sum_c x
    per_row = ((lse + m)
               - (1.0 - epsilon) * x_t
               - (epsilon / num_classes) * row_sum)                 # (TB, 1)

    # Mask rows of the (possibly padded) last batch tile.  Must happen before
    # the tile-wide sum (padded rows may be garbage / NaN).
    row_ids = (pl.program_id(0) * tile_b
               + jax.lax.broadcasted_iota(jnp.int32, per_row.shape, 0))
    per_row = jnp.where(row_ids < batch, per_row, 0.0)

    # Single fused reduction -> per-tile partial (scalar in SMEM).
    partial_ref[0, 0] = jnp.sum(per_row)


def cross_entropy_label_smooth(logits, targets, *, epsilon=0.1, tile_b=None):
    """logits: (B, C) float (f32 or bf16); targets: (B,) int labels.

    Returns scalar float32 loss, matching:
        loss = (-smooth_onehot * log_softmax(logits)).mean(0).sum()
    """
    B, C = logits.shape
    targets2d = targets.astype(jnp.int32).reshape(B, 1)

    itemsize = jnp.dtype(logits.dtype).itemsize
    # min sublane granularity: 8 rows for 32-bit, 16 rows for 16-bit dtypes
    min_rows = 16 if itemsize < 4 else 8

    # ---- VMEM budget (per chip generation, with headroom) -------------------
    try:
        vmem_cap = int(pltpu.get_tpu_info().vmem_capacity_bytes)
    except Exception:  # conservative fallback (v7x = 64 MiB per TensorCore)
        vmem_cap = 64 << 20
    vmem_budget = min((vmem_cap * 3) // 4, 48 << 20)

    # Per-row VMEM cost: double-buffered input tile + ~4 f32 (TB, C) temps
    # (cast, shifted/exp, mask/select) generated inside the kernel.
    bytes_per_row = C * (2 * itemsize + 4 * 4)
    target_tile_bytes = 4 << 20   # ~4 MiB input tile: long, efficient DMAs

    # ---- tile_b selection ----------------------------------------------------
    if tile_b is None:
        rows_from_target = max(target_tile_bytes // (C * itemsize), min_rows)
        rows_from_vmem = max((vmem_budget - (2 << 20)) // bytes_per_row, min_rows)
        tile_b = max(_round_down(min(rows_from_target, rows_from_vmem), min_rows),
                     min_rows)

    # Clamp to the batch (full-dim block is always layout-legal); normalize
    # user-supplied tiles to the sublane granularity.
    if tile_b >= B:
        tile_b = B
    elif tile_b % min_rows != 0:
        tile_b = _round_up(tile_b, min_rows)
        if tile_b >= B:
            tile_b = B

    # Megacore: guarantee >= 2 grid steps when each half-tile is still large
    # enough (>= ~1 MiB) that the extra per-step overhead is noise.  On 1-TC
    # chips this is harmless; on v7x it shards the "parallel" axis across TCs.
    if tile_b == B and B > min_rows:
        half = _round_up(pl.cdiv(B, 2), min_rows)
        if half < B and half * C * itemsize >= (1 << 20):
            tile_b = half

    num_tiles = pl.cdiv(B, tile_b)

    kernel = functools.partial(
        _ce_label_smooth_kernel,
        epsilon=float(epsilon),
        num_classes=int(C),
        batch=int(B),
        tile_b=int(tile_b),
    )

    # Scoped-VMEM limit: estimated real usage (double-buffered input + f32
    # temporaries), floored at 32 MiB (v5e default is 16 MiB) and capped so a
    # 64 MiB-VMEM chip (v7x) keeps headroom.
    est_usage = 2 * tile_b * C * itemsize + 4 * tile_b * C * 4 + (1 << 20)
    vmem_limit = int(min(max(est_usage, 32 << 20),
                         max(vmem_cap - (16 << 20), 32 << 20)))

    cost = pl.CostEstimate(
        flops=5 * B * C,              # max, sub, reduce adds, mul/adds
        transcendentals=B * C,        # exp
        bytes_accessed=B * C * itemsize + B * 4 + num_tiles * 4,
    )

    partials = pl.pallas_call(
        kernel,
        out_shape=jax.ShapeDtypeStruct((num_tiles, 1), jnp.float32),
        grid=(num_tiles,),
        in_specs=[
            pl.BlockSpec((tile_b, C), lambda i: (i, 0)),   # logits tile (VMEM)
            pl.BlockSpec((tile_b, 1), lambda i: (i, 0)),   # targets tile (VMEM)
        ],
        out_specs=pl.BlockSpec((1, 1), lambda i: (i, 0),
                               memory_space=pltpu.SMEM),   # per-tile partial
        compiler_params=pltpu.CompilerParams(
            dimension_semantics=("parallel",),             # independent tiles
            vmem_limit_bytes=vmem_limit,
        ),
        cost_estimate=cost,
    )(logits, targets2d)

    return jnp.sum(partials) / jnp.float32(B)


def _reference(logits, targets, epsilon=0.1):
    # pure-JAX reference matching the PyTorch module
    B, C = logits.shape
    log_probs = jax.nn.log_softmax(logits.astype(jnp.float32), axis=1)
    onehot = jax.nn.one_hot(targets, C, dtype=jnp.float32)
    smooth = (1.0 - epsilon) * onehot + epsilon / C
    return jnp.sum(jnp.mean(-smooth * log_probs, axis=0))


if __name__ == "__main__":
    key = jax.random.PRNGKey(0)
    k1, k2, k3, k4, k5, k6 = jax.random.split(key, 6)

    # Test 1: small f32, single full-dim tile
    batch, num_classes = 8, 32
    logits = jax.random.normal(k1, (batch, num_classes), dtype=jnp.float32)
    targets = jax.random.randint(k2, (batch,), 0, num_classes, dtype=jnp.int32)
    loss = cross_entropy_label_smooth(logits, targets, epsilon=0.1)
    jax.block_until_ready(loss)
    ref = _reference(logits, targets, epsilon=0.1)
    assert jnp.allclose(loss, ref, rtol=1e-5, atol=1e-5), (loss, ref)

    # Test 2: user tile -> multi-tile grid with a masked remainder (B=20, TB=8)
    batch2, num_classes2 = 20, 32
    logits2 = jax.random.normal(k3, (batch2, num_classes2), dtype=jnp.float32)
    targets2 = jax.random.randint(k4, (batch2,), 0, num_classes2, dtype=jnp.int32)
    loss2 = cross_entropy_label_smooth(logits2, targets2, epsilon=0.1, tile_b=8)
    jax.block_until_ready(loss2)
    ref2 = _reference(logits2, targets2, epsilon=0.1)
    assert jnp.allclose(loss2, ref2, rtol=1e-5, atol=1e-5), (loss2, ref2)

    # Test 3: bf16 logits (halved HBM traffic), bf16 max/extract + f32 accum
    logits_bf16 = logits.astype(jnp.bfloat16)
    loss3 = cross_entropy_label_smooth(logits_bf16, targets, epsilon=0.1)
    jax.block_until_ready(loss3)
    ref3 = _reference(logits_bf16, targets, epsilon=0.1)
    assert jnp.allclose(loss3, ref3, rtol=1e-4, atol=1e-4), (loss3, ref3)

    # Test 4: larger batch -> exercises the byte-budgeted tiling and the
    # two-step (megacore) split path
    batch4, num_classes4 = 2048, 256
    logits4 = jax.random.normal(k5, (batch4, num_classes4), dtype=jnp.float32)
    targets4 = jax.random.randint(k6, (batch4,), 0, num_classes4, dtype=jnp.int32)
    loss4 = cross_entropy_label_smooth(logits4, targets4, epsilon=0.1)
    jax.block_until_ready(loss4)
    ref4 = _reference(logits4, targets4, epsilon=0.1)
    assert jnp.allclose(loss4, ref4, rtol=1e-5, atol=1e-5), (loss4, ref4)

    print("KERNEL_OK")
</pallas_src>

<mosaic_0001>
module attributes {stable_mosaic.version = 11 : i64} {
  func.func @_ce_label_smooth_kernel(%arg0: i32, %arg1: memref<8x32xf32, #tpu.memory_space<vmem>>, %arg2: memref<8x1xi32, #tpu.memory_space<vmem>>, %arg3: memref<1x1xf32, #tpu.memory_space<smem>>) attributes {dimension_semantics = [#tpu.dimension_semantics<parallel>], iteration_bounds = array<i64: 1>, scalar_prefetch = 0 : i64, scratch_operands = 0 : i64, tpu.core_type = #tpu.core_type<tc>, window_params = [{transform_indices = @transform_0, window_bounds = array<i64: 8, 32>}, {transform_indices = @transform_1, window_bounds = array<i64: 8, 1>}, {transform_indices = @transform_2, window_bounds = array<i64: 1, 1>}]} {
    %c0 = arith.constant 0 : index
    %c0_0 = arith.constant 0 : index
    %0 = vector.load %arg1[%c0, %c0_0] : memref<8x32xf32, #tpu.memory_space<vmem>>, vector<8x32xf32>
    %c0_1 = arith.constant 0 : index
    %c0_2 = arith.constant 0 : index
    %1 = vector.load %arg2[%c0_1, %c0_2] : memref<8x1xi32, #tpu.memory_space<vmem>>, vector<8x1xi32>
    %cst = arith.constant dense<0xFF800000> : vector<8xf32>
    %2 = vector.multi_reduction <maximumf>, %0, %cst [1] : vector<8x32xf32> to vector<8xf32>
    %3 = vector.shape_cast %2 : vector<8xf32> to vector<8x1xf32>
    %4 = tpu.iota {dimensions = array<i32: 1>} : vector<1x32xi32>
    %5 = vector.broadcast %4 : vector<1x32xi32> to vector<8x32xi32>
    %6 = vector.broadcast %1 : vector<8x1xi32> to vector<8x32xi32>
    %7 = arith.cmpi eq, %5, %6 : vector<8x32xi32>
    %cst_3 = arith.constant 0.000000e+00 : f32
    %8 = vector.broadcast %cst_3 : f32 to vector<8x32xf32>
    %9 = arith.select %7, %0, %8 : vector<8x32xi1>, vector<8x32xf32>
    %cst_4 = arith.constant dense<0.000000e+00> : vector<8xf32>
    %10 = vector.multi_reduction <add>, %9, %cst_4 [1] : vector<8x32xf32> to vector<8xf32>
    %11 = vector.shape_cast %10 : vector<8xf32> to vector<8x1xf32>
    %cst_5 = arith.constant dense<0.000000e+00> : vector<8xf32>
    %12 = vector.multi_reduction <add>, %0, %cst_5 [1] : vector<8x32xf32> to vector<8xf32>
    %13 = vector.shape_cast %12 : vector<8xf32> to vector<8x1xf32>
    %14 = vector.broadcast %3 : vector<8x1xf32> to vector<8x32xf32>
    %15 = arith.subf %0, %14 : vector<8x32xf32>
    %16 = math.exp %15 : vector<8x32xf32>
    %cst_6 = arith.constant dense<0.000000e+00> : vector<8xf32>
    %17 = vector.multi_reduction <add>, %16, %cst_6 [1] : vector<8x32xf32> to vector<8xf32>
    %18 = vector.shape_cast %17 : vector<8xf32> to vector<8x1xf32>
    %19 = math.log %18 : vector<8x1xf32>
    %20 = arith.addf %19, %3 : vector<8x1xf32>
    %cst_7 = arith.constant 0.899999976 : f32
    %21 = vector.broadcast %cst_7 : f32 to vector<8x1xf32>
    %22 = arith.mulf %21, %11 : vector<8x1xf32>
    %23 = arith.subf %20, %22 : vector<8x1xf32>
    %cst_8 = arith.constant 3.125000e-03 : f32
    %24 = vector.broadcast %cst_8 : f32 to vector<8x1xf32>
    %25 = arith.mulf %24, %13 : vector<8x1xf32>
    %26 = arith.subf %23, %25 : vector<8x1xf32>
    %c8_i32 = arith.constant 8 : i32
    %27 = arith.muli %arg0, %c8_i32 : i32
    %28 = tpu.iota {dimensions = array<i32: 0>} : vector<8x1xi32>
    %29 = vector.broadcast %27 : i32 to vector<8x1xi32>
    %30 = arith.addi %29, %28 : vector<8x1xi32>
    %c8_i32_9 = arith.constant 8 : i32
    %31 = vector.broadcast %c8_i32_9 : i32 to vector<8x1xi32>
    %32 = arith.cmpi slt, %30, %31 : vector<8x1xi32>
    %cst_10 = arith.constant 0.000000e+00 : f32
    %33 = vector.broadcast %cst_10 : f32 to vector<8x1xf32>
    %34 = arith.select %32, %26, %33 : vector<8x1xi1>, vector<8x1xf32>
    %35 = vector.shape_cast %34 : vector<8x1xf32> to vector<1x8x1xf32>
    %cst_11 = arith.constant dense<0.000000e+00> : vector<1xf32>
    %36 = vector.multi_reduction <add>, %35, %cst_11 [1, 2] : vector<1x8x1xf32> to vector<1xf32>
    %37 = vector.shape_cast %36 : vector<1xf32> to vector<1x1x1xf32>
    %38 = vector.extract %37[0, 0, 0] : f32 from vector<1x1x1xf32>
    %c0_12 = arith.constant 0 : index
    %c0_13 = arith.constant 0 : index
    %39 = memref.load %arg3[%c0_12, %c0_13] : memref<1x1xf32, #tpu.memory_space<smem>>
    memref.store %38, %arg3[%c0_12, %c0_13] : memref<1x1xf32, #tpu.memory_space<smem>>
    return
  }
  func.func @transform_0(%arg0: i32) -> (i32, i32) {
    %c0_i32 = arith.constant 0 : i32
    %c0_i32_0 = arith.constant 0 : i32
    return %arg0, %c0_i32 : i32, i32
  }
  func.func @transform_1(%arg0: i32) -> (i32, i32) {
    %c0_i32 = arith.constant 0 : i32
    %c0_i32_0 = arith.constant 0 : i32
    return %arg0, %c0_i32 : i32, i32
  }
  func.func @transform_2(%arg0: i32) -> (i32, i32) {
    %c0_i32 = arith.constant 0 : i32
    %c0_i32_0 = arith.constant 0 : i32
    return %arg0, %c0_i32 : i32, i32
  }
}

</mosaic_0001>

<bundles_post_ra>
// kernel: tpu_custom_call.1
= control target key start
LH: loop header
LB: loop body
LE: loop exit
PB: predicated region body
PF: predicated region fallthrough
CT: control target
= control target key end

     0   :  { %vm14_vm0 = vcmask 261120   ;;  %s137_s0 = inlined_call_operand.vmem [shape: f32[8,32], index: 0, kind: input, shape index: {}]   ;;  %s138_s1 = inlined_call_operand.vmem [shape: s32[8,1], index: 1, kind: input, shape index: {}]   ;;  %s139_s2 = inlined_call_operand.hbm [shape: f32[1,1], index: 2, kind: output, shape index: {}]  }
   0x1   :  { %v12_v0 = vld [vmem:[%s137_s0] sm:$0xff] }
   0x2   :  { %7 = vsyncpa [#allocation3], 0  ;;  %v15_v1 = vsel %vm14_vm0, %v12_v0, -inf  ;;  %v98_v2 = vmov 0   ;;  %v13_v3 = vld [vmem:[%s138_s1] sm:$0xff]  ;;  %v18_v7 = vlaneseq  ;;  %v28_v14 = vsel %vm14_vm0, %v12_v0, 0.0 }
   0x3   :  { %81 = vset.pattern.permute.xlu0 %v98_v2  ;;  %vm51_vm2 = vcmask 7168   ;;  %s86_s14 = scalar_lea.hbm %s139_s2, 16 }
   0x4   :  { %16 = vmax.xlane.f32.xlu0 %v15_v1  ;;  %v19_v8 = vand.u32 127, %v18_v7  ;;  %p87_p0 = scmp.ne.s32.totalorder %s139_s2, %s86_s14  ;;  %p90_p1 = scmp.lt.u32.totalorder %s86_s14, %s139_s2 }
   0x6   :  { %p92_p2 = pnand %p90_p1, %p87_p0 }
  0x1a   :  { %21 = vperm.xlu0 %81, %v13_v3  }
  0x91   :  { %v17_v4 = vpop.xlane.xlu0 %16 }
  0x92   :  { %v31_v5 = vsub.f32 %v12_v0, %v17_v4 }
  0x94   :  { %v32_v6 = vmul.f32 1.442695, %v31_v5 }
  0x96   :  { %82 = vpow2.f32 %v32_v6 }
  0x99   :  { %v22_v9 = vpop.permute.xlu0 %21 }
  0x9a   :  { %vm23_vm1 = vcmp.eq.s32.totalorder %v19_v8, %v22_v9 }
  0x9b   :  { %v24_v11 = vsel %vm23_vm1, %v12_v0, 0.0 }
  0x9c   :  { %v25_v13 = vsel %vm14_vm0, %v24_v11, 0.0 }
  0xa0   :  { %v83_v10 = vpop.eup %82 }
  0xa1   :  { %v34_v12 = vsel %vm14_vm0, %v83_v10, 0.0 }
  0xa2   :  { %35 = vadd.xlane.f32.xlu1 %v34_v12 }
  0xa6   :  { %26 = vadd.xlane.f32.xlu1 %v25_v13 }
  0xaa   :  { %29 = vadd.xlane.f32.xlu1 %v28_v14 }
 0x12f   :  { %v36_v15 = vpop.xlane.xlu1 %35 }
 0x130   :  { %84 = vlog2.f32 %v36_v15 }
 0x133   :  { %v27_v16 = vpop.xlane.xlu1 %26 }
 0x134   :  { %v40_v21 = vmul.f32 0.9, %v27_v16 }
 0x137   :  { %v30_v18 = vpop.xlane.xlu1 %29 }
 0x138   :  { %v42_v22 = vmul.f32 0.003125, %v30_v18 }
 0x13a   :  { %v85_v17 = vpop.eup %84 }
 0x13b   :  { %v38_v19 = vmul.f32 0.6931472, %v85_v17 }
 0x13d   :  { %v39_v20 = vadd.f32 %v38_v19, %v17_v4 }
 0x13f   :  { %v41_v23 = vsub.f32 %v39_v20, %v40_v21 }
 0x141   :  { %v43_v24 = vsub.f32 %v41_v23, %v42_v22 }
 0x143   :  { %v52_v25 = vsel %vm51_vm2, %v43_v24, 0.0 }
 0x144   :  { %53 = vadd.xlane.f32.xlu1 %v52_v25 }
 0x1d1   :  { %v54_v26 = vpop.xlane.xlu1 %53 }
 0x1d2   :  { %v55_v27 = vrot.slane %v54_v26, 4 }
 0x1d4   :  { %v56_v28 = vadd.f32 %v55_v27, %v54_v26 }
 0x1d6   :  { %v57_v29 = vrot.slane %v56_v28, 2 }
 0x1d8   :  { %v58_v30 = vadd.f32 %v57_v29, %v56_v28 }
 0x1da   :  { %v59_v31 = vrot.slane %v58_v30, 1 }
 0x1dc   :  { %v60_v32 = vadd.f32 %v59_v31, %v58_v30 }
 0x1de   :  { %77 = vpush %v60_v32 }
 0x20f   :  { %s78_s0 = spop %77 }
 0x210   :  { %63 = sst [smem:[#allocation2]] %s78_s0 }
 0x211   :  { %95 = shalt.err (!%p92_p2)
}
 0x212   :  { %s99_s19 = smov [#allocation2]  }
 0x213   :  { %71 = dma.smem_to_hbm %s99_s19, 16, %s139_s2, [#allocation3]  }
 0x214   :  { %96 = dma.done.wait [#allocation3], 16  }
 0x215   :  { %97 = vsyncadd [#allocation3], 4294967280 }
 0x216   :  { %75 = sfence }
 0x217   :  { %76 = vsyncpa [#allocation3], 1 }

</bundles_post_ra>
